<compile_context>
chip_gen: v7x
topology: tpu7x:2x2x1
jax: 0.10.0
libtpu: 0.0.40
codegen_flags: <defaults>
</compile_context>

<pallas_src>
import functools

import jax
import jax.numpy as jnp
from jax.experimental import pallas as pl
from jax.experimental.pallas import tpu as pltpu  # noqa: F401  (TPU backend)


def pack_dueling_params(wa, ba, wv, bv):
    """Build the fused weight operand ONCE at init time.

    Returns W_aug of shape [D+1, N_mm]:
      rows 0..D-1 : [ Wa | Wv | 0-pad ]   (advantage cols 0..A-1, value col A)
      row  D      : [ ba | bv | 0-pad ]   (bias row, added inside the kernel)
    """
    D, A = wa.shape
    n_mm = max(128, pl.cdiv(A + 1, 128) * 128)
    w_aug = jnp.zeros((D + 1, n_mm), dtype=wa.dtype)
    w_aug = w_aug.at[:D, :A].set(wa)
    w_aug = w_aug.at[:D, A:A + 1].set(wv)
    w_aug = w_aug.at[D, :A].set(ba.reshape(A))
    w_aug = w_aug.at[D, A:A + 1].set(bv.reshape(1))
    return w_aug, A


def _dueling_head_kernel(x_ref, w_ref, out_ref, *, num_actions, batch, prev_dim):
    A = num_actions
    D = prev_dim

    # One fused MXU matmul.  Columns of y:
    #   [0 .. A-1] -> advantage a, [A] -> value v, rest -> 0 (zero-padded W).
    y = jnp.dot(x_ref[...], w_ref[pl.ds(0, D), :],
                preferred_element_type=jnp.float32)
    # Bias row folded into the same operand; sublane-broadcast add.
    y = y + w_ref[pl.ds(D, 1), :].astype(jnp.float32)

    # Global scalar mean over ALL elements of a (torch's a.mean()), selected
    # with an iota mask (pure VPU) so no lane-misaligned slice is needed.
    col = jax.lax.broadcasted_iota(jnp.int32, y.shape, dimension=1)
    a_sum = jnp.sum(jnp.where(col < A, y, 0.0))
    a_bar = a_sum * (1.0 / float(batch * A))

    # Value column, broadcast back across lanes.
    v = y[:, A:A + 1]                       # [B, 1]

    # q over the full lane group: cols 0..A-1 are the real q; the remaining
    # lanes are unused filler that the wrapper never reads.
    q_full = y + v - a_bar                  # [B, N_mm]

    # Lane-aligned pack: one concat of two full 128-multiple lane groups.
    out_ref[...] = jnp.concatenate([y, q_full], axis=-1)


def dueling_head(x, w_aug, num_actions):
    """x: [B, D]; w_aug: pre-packed [D+1, N_mm] from pack_dueling_params.

    Returns (v, a, q) exactly like the torch module, in x.dtype.
    """
    B, D = x.shape
    A = num_actions
    n_mm = w_aug.shape[-1]
    n_out = 2 * n_mm

    kernel = functools.partial(
        _dueling_head_kernel, num_actions=A, batch=B, prev_dim=D)

    # Tiny problem: one grid point, full-array blocks (block_shape == array
    # shape, so the (8,128) divisibility rule is waived for the inputs).
    full = lambda shape: pl.BlockSpec(shape, lambda: (0,) * len(shape))

    cost = pl.CostEstimate(
        flops=2 * B * D * n_mm,
        transcendentals=0,
        bytes_accessed=(x.size * x.dtype.itemsize
                        + w_aug.size * w_aug.dtype.itemsize
                        + B * n_out * 4),
    )

    packed = pl.pallas_call(
        kernel,
        out_shape=jax.ShapeDtypeStruct((B, n_out), jnp.float32),
        grid=(),
        in_specs=[
            full((B, D)),          # activations
            full((D + 1, n_mm)),   # fused weights + bias row (pre-packed)
        ],
        out_specs=full((B, n_out)),
        cost_estimate=cost,
    )(x, w_aug)

    # Cheap static slices in the wrapper to recover the three torch outputs.
    dt = x.dtype
    a = packed[:, :A].astype(dt)
    v = packed[:, A:A + 1].astype(dt)
    q = packed[:, n_mm:n_mm + A].astype(dt)
    return v, a, q


def _reference(x, wa, ba, wv, bv):
    a = x @ wa + ba
    v = x @ wv + bv
    a_bar = jnp.mean(a)
    q = v + a - a_bar
    return v, a, q


if __name__ == "__main__":
    key = jax.random.PRNGKey(0)
    B, D, A = 8, 32, 8   # batch, prev_out_dim, num_actions

    k_x, k_wa, k_ba, k_wv, k_bv = jax.random.split(key, 5)
    x = jax.random.normal(k_x, (B, D), dtype=jnp.float32)

    # Deterministic parameter init (synthetic; mimics nn.Linear scale ~1/sqrt(D)).
    scale = 1.0 / jnp.sqrt(jnp.float32(D))
    wa = jax.random.uniform(k_wa, (D, A), jnp.float32, -scale, scale)
    ba = jax.random.uniform(k_ba, (1, A), jnp.float32, -scale, scale)
    wv = jax.random.uniform(k_wv, (D, 1), jnp.float32, -scale, scale)
    bv = jax.random.uniform(k_bv, (1, 1), jnp.float32, -scale, scale)

    # Init-time packing (hoisted out of the per-call path).
    w_aug, num_actions = pack_dueling_params(wa, ba, wv, bv)
    w_aug = jax.block_until_ready(w_aug)

    v, a, q = jax.block_until_ready(dueling_head(x, w_aug, num_actions))

    v_ref, a_ref, q_ref = _reference(x, wa, ba, wv, bv)
    assert jnp.allclose(v, v_ref, atol=1e-5, rtol=1e-5)
    assert jnp.allclose(a, a_ref, atol=1e-5, rtol=1e-5)
    assert jnp.allclose(q, q_ref, atol=1e-5, rtol=1e-5)

    print("KERNEL_OK")
</pallas_src>

<mosaic_0001>
module attributes {stable_mosaic.version = 11 : i64} {
  func.func @_dueling_head_kernel(%arg0: memref<8x32xf32, #tpu.memory_space<vmem>>, %arg1: memref<33x128xf32, #tpu.memory_space<vmem>>, %arg2: memref<8x256xf32, #tpu.memory_space<vmem>>) attributes {dimension_semantics = [], scalar_prefetch = 0 : i64, scratch_operands = 0 : i64, tpu.core_type = #tpu.core_type<tc>} {
    %c0 = arith.constant 0 : index
    %c0_0 = arith.constant 0 : index
    %0 = vector.load %arg0[%c0, %c0_0] : memref<8x32xf32, #tpu.memory_space<vmem>>, vector<8x32xf32>
    %c0_1 = arith.constant 0 : index
    %c0_2 = arith.constant 0 : index
    %1 = vector.load %arg1[%c0_1, %c0_2] : memref<33x128xf32, #tpu.memory_space<vmem>>, vector<32x128xf32>
    %cst = arith.constant dense<0.000000e+00> : vector<8x128xf32>
    %2 = tpu.matmul %0, %1, %cst {dimension_numbers = #tpu.dot_dimension_numbers<[1], [0], [0], [1], [0, 0, 1, 1], [], []>} : vector<8x32xf32>, vector<32x128xf32>, vector<8x128xf32> -> vector<8x128xf32>
    %c32 = arith.constant 32 : index
    %c0_3 = arith.constant 0 : index
    %3 = vector.load %arg1[%c32, %c0_3] : memref<33x128xf32, #tpu.memory_space<vmem>>, vector<1x128xf32>
    %4 = vector.broadcast %3 : vector<1x128xf32> to vector<8x128xf32>
    %5 = arith.addf %2, %4 : vector<8x128xf32>
    %6 = tpu.iota {dimensions = array<i32: 1>} : vector<8x128xi32>
    %c8_i32 = arith.constant 8 : i32
    %7 = vector.broadcast %c8_i32 : i32 to vector<8x128xi32>
    %8 = arith.cmpi slt, %6, %7 : vector<8x128xi32>
    %cst_4 = arith.constant 0.000000e+00 : f32
    %9 = vector.broadcast %cst_4 : f32 to vector<8x128xf32>
    %10 = arith.select %8, %5, %9 : vector<8x128xi1>, vector<8x128xf32>
    %11 = vector.shape_cast %10 : vector<8x128xf32> to vector<1x8x128xf32>
    %cst_5 = arith.constant dense<0.000000e+00> : vector<1xf32>
    %12 = vector.multi_reduction <add>, %11, %cst_5 [1, 2] : vector<1x8x128xf32> to vector<1xf32>
    %13 = vector.shape_cast %12 : vector<1xf32> to vector<1x1x1xf32>
    %14 = vector.extract %13[0, 0, 0] : f32 from vector<1x1x1xf32>
    %cst_6 = arith.constant 1.562500e-02 : f32
    %15 = arith.mulf %14, %cst_6 : f32
    %16 = vector.extract_strided_slice %5 {offsets = [0, 8], sizes = [8, 1], strides = [1, 1]} : vector<8x128xf32> to vector<8x1xf32>
    %17 = vector.broadcast %16 : vector<8x1xf32> to vector<8x128xf32>
    %18 = arith.addf %5, %17 : vector<8x128xf32>
    %19 = vector.broadcast %15 : f32 to vector<8x128xf32>
    %20 = arith.subf %18, %19 : vector<8x128xf32>
    %21 = tpu.concatenate %5, %20 in 1 : vector<8x128xf32>, vector<8x128xf32> -> vector<8x256xf32>
    %c0_7 = arith.constant 0 : index
    %c0_8 = arith.constant 0 : index
    %22 = vector.load %arg2[%c0_7, %c0_8] : memref<8x256xf32, #tpu.memory_space<vmem>>, vector<8x256xf32>
    tpu.vector_store %arg2[%c0_7, %c0_8], %21 {strides = array<i32>} : memref<8x256xf32, #tpu.memory_space<vmem>>, vector<8x256xf32>,
    return
  }
}

</mosaic_0001>

<bundles_post_ra>
// kernel: tpu_custom_call.1
= control target key start
LH: loop header
LB: loop body
LE: loop exit
PB: predicated region body
PF: predicated region fallthrough
CT: control target
= control target key end

     0   :  { %7 = vsyncpa [#allocation3], 0  ;;  %s337_s0 = inlined_call_operand.hbm [shape: f32[8,32], index: 0, kind: input, shape index: {}]   ;;  %s338_s1 = inlined_call_operand.hbm [shape: f32[33,128], index: 1, kind: input, shape index: {}]   ;;  %s339_s2 = inlined_call_operand.hbm [shape: f32[8,256], index: 2, kind: output, shape index: {}]  }
   0x1   :  { %8 = vsyncpa [#allocation6], 0 }
   0x2   :  { %9 = vsyncpa [#allocation4], 0  ;;  %s270_s9 = smov [#allocation2]   ;;  %s271_s11 = smov [#allocation5]  }
   0x3   :  { %s16_s10 = sshll.u32 %s270_s9, 4  ;;  %s25_s12 = sshll.u32 %s271_s11, 4  ;;  %s17_s10 = int_to_ptr.vmem [resolvable:$true] %s16_s10  ;;  %s294_s12 = int_to_ptr.vmem [resolvable:$true] %s25_s12 }
   0x4   :  { %s198_s15 = scalar_lea.hbm %s337_s0, 128 }
   0x5   :  { %p199_p0 = scmp.ne.s32.totalorder %s337_s0, %s198_s15  ;;  %p202_p1 = scmp.lt.u32.totalorder %s198_s15, %s337_s0 }
   0x7   :  { %p204_p2 = pnand %p202_p1, %p199_p0 }
   0x9   :  { %207 = shalt.err (!%p204_p2)
}
   0xa   :  { %s208_s20 = scalar_lea.vmem %s17_s10, 128  ;;  %p213_p4 = scmp.lt.s32.totalorder %s17_s10, %s17_s10 }
   0xb   :  { %p209_p3 = scmp.ne.s32.totalorder %s17_s10, %s208_s20  ;;  %p214_p5 = scmp.lt.s32.totalorder %s208_s20, %s208_s20 }
   0xd   :  { %p215_p6 = por %p214_p5, %p213_p4 }
   0xf   :  { %p216_p7 = pnand %p215_p6, %p209_p3 }
  0x11   :  { %219 = shalt.err (!%p216_p7)
}
  0x12   :  { %19 = dma.hbm_to_vmem [thread:$0]  %s337_s0, 128, %s17_s10, [#allocation3]  }
  0x13   :  { %s220_s25 = scalar_lea.hbm %s338_s1, 640 }
  0x14   :  { %p221_p8 = scmp.ne.s32.totalorder %s338_s1, %s220_s25  ;;  %p224_p9 = scmp.lt.u32.totalorder %s220_s25, %s338_s1 }
  0x16   :  { %p226_p10 = pnand %p224_p9, %p221_p8 }
  0x18   :  { %229 = shalt.err (!%p226_p10)
}
  0x19   :  { %s230_s30 = scalar_lea.vmem %s294_s12, 640  ;;  %p235_p12 = scmp.lt.s32.totalorder %s294_s12, %s294_s12 }
  0x1a   :  { %p231_p11 = scmp.ne.s32.totalorder %s294_s12, %s230_s30  ;;  %p236_p13 = scmp.lt.s32.totalorder %s230_s30, %s230_s30 }
  0x1c   :  { %p237_p0 = por %p236_p13, %p235_p12 }
  0x1e   :  { %p238_p1 = pnand %p237_p0, %p231_p11 }
  0x20   :  { %241 = shalt.err (!%p238_p1)
}
  0x21   :  { %s272_s0 = smov 128   ;;  %s273_s3 = smov 8  }
  0x22   :  { %31 = dma.hbm_to_vmem [thread:$0]  %s338_s1, 640, %s294_s12, [#allocation6], %s272_s0, %s272_s0, %s273_s3  }
  0x23   :  { %264 = dma.done.wait [#allocation3], 128  }
  0x24   :  { %265 = vsyncadd [#allocation3], 4294967168 }
  0x25   :  { %266 = dma.done.wait [#allocation6], 640  }
  0x26   :  { %267 = vsyncadd [#allocation6], 4294966656  ;;  %v274_v0 = vmov 0.0|0.0   ;;  %vm275_vm0 = vmmov 0   ;;  %v276_v1 = vmov 0.0   ;;  %v39_v2 = vld [vmem:[#allocation5] sm:$0xff]  ;;  %v122_v10 = vlaneseq }
  0x27   :  { %180 = vmatprep.subr.bf16.mxu0 %v274_v0  ;;  %177 = vmatprep.mubr.msk.f32.mxu0 %vm275_vm0, %v276_v1  ;;  %v40_v3 = vld [vmem:[#allocation5 + $0x8] sm:$0xff]  ;;  %v41_v4 = vld [vmem:[#allocation5 + $0x10] sm:$0xff]  ;;  %v42_v6 = vld [vmem:[#allocation5 + $0x18] sm:$0xff]  ;;  %vm48_vm1 = vcmask 261120   ;;  %v277_v9 = vmov 8   ;;  %s278_s7 = smov [#allocation7]  }
  0x28   :  { %v181_v5 = vpack.c.bf16 %v40_v3, %v39_v2  ;;  %v184_v7 = vpack.c.bf16 %v42_v6, %v41_v4  ;;  %v38_v8 = vld [vmem:[#allocation2] sm:$0xff]  ;;  %197 = vset.pattern.permute.xlu0 %v277_v9  ;;  %v123_v11 = vand.u32 127, %v122_v10  ;;  %v162_v12 = vld [vmem:[#allocation5 + $0x20] ss:$0 sm:$0xff]  ;;  %s152_s8 = sshll.u32 %s278_s7, 4  ;;  %s153_s8 = int_to_ptr.vmem [resolvable:$true] %s152_s8 }
  0x29   :  { %s242_s9 = scalar_lea.vmem %s153_s8, 256  ;;  %p247_p3 = scmp.lt.s32.totalorder %s153_s8, %s153_s8 }
  0x2a   :  { %182 = vmatpush3.bf16.msra.mxu0 %v181_v5  ;;  %vm124_vm2 = vcmp.lt.s32.totalorder %v123_v11, 8  ;;  %p243_p2 = scmp.ne.s32.totalorder %s153_s8, %s242_s9  ;;  %p248_p4 = scmp.lt.s32.totalorder %s242_s9, %s242_s9 }
  0x2b   :  { %183 = vmatprep.subr.bf16.mxu0 %v274_v0 }
  0x2c   :  { %p249_p5 = por %p248_p4, %p247_p3 }
  0x2e   :  { %185 = vmatpush3.bf16.msra.mxu0 %v184_v7  ;;  %p250_p6 = pnand %p249_p5, %p243_p2 }
  0x31   :  { %178 = vmatmul.mubr.msk.f32.vlgmr.msra.gmra.mrb[0].mxu0 %vm48_vm1, %v38_v8 }
 0x104   :  { %v118_v13 = vpop.f32.mrb[0].mxu0 }
 0x105   :  { %v119_v14 = vadd.f32 %v162_v12, %v118_v13  ;;  %v179_v15 = vpop.f32.mrb[1].mxu0 }
 0x107   :  { %144 = vst [vmem:[#allocation7] sm:$0xff] %v119_v14  ;;  %v125_v16 = vsel %vm124_vm2, %v119_v14, 0.0 }
 0x108   :  { %126 = vadd.xlane.f32.xlu0 %v125_v16 }
 0x11e   :  { %138 = vperm.xlu0 %197, %v119_v14  }
 0x195   :  { %v127_v17 = vpop.xlane.xlu0 %126 }
 0x196   :  { %v128_v18 = vrot.slane %v127_v17, 4 }
 0x198   :  { %v129_v19 = vadd.f32 %v128_v18, %v127_v17 }
 0x19a   :  { %v130_v20 = vrot.slane %v129_v19, 2 }
 0x19c   :  { %v131_v21 = vadd.f32 %v130_v20, %v129_v19 }
 0x19d   :  { %v139_v24 = vpop.permute.xlu0 %138 }
 0x19e   :  { %v132_v22 = vrot.slane %v131_v21, 1  ;;  %v141_v25 = vadd.f32 %v139_v24, %v119_v14 }
 0x1a0   :  { %v133_v23 = vadd.f32 %v132_v22, %v131_v21 }
 0x1a2   :  { %186 = vpush %v133_v23 }
 0x1d3   :  { %s187_s1 = spop %186 }
 0x1d4   :  { %s135_s6 = smul.f32 0.015625, %s187_s1 }
 0x1d6   :  { %v142_v26 = vstv %s135_s6 }
 0x1d7   :  { %v143_v27 = vsub.f32 %v141_v25, %v142_v26 }
 0x1d9   :  { %145 = vst [vmem:[#allocation7 + $0x8] sm:$0xff] %v143_v27 }
 0x1da   :  { %253 = shalt.err (!%p250_p6)
}
 0x1db   :  { %s254_s12 = scalar_lea.hbm %s339_s2, 256 }
 0x1dc   :  { %p255_p7 = scmp.ne.s32.totalorder %s339_s2, %s254_s12  ;;  %p258_p8 = scmp.lt.u32.totalorder %s254_s12, %s339_s2 }
 0x1de   :  { %p260_p9 = pnand %p258_p8, %p255_p7 }
 0x1e0   :  { %263 = shalt.err (!%p260_p9)
}
 0x1e1   :  { %155 = dma.vmem_to_hbm [thread:$0]  %s153_s8, 256, %s339_s2, [#allocation4]  }
 0x1e2   :  { %268 = dma.done.wait [#allocation4], 256  }
 0x1e3   :  { %269 = vsyncadd [#allocation4], 4294967040 }
 0x1e4   :  { %159 = vsyncpa [#allocation3], 1 }
 0x1e5   :  { %160 = vsyncpa [#allocation6], 1 }
 0x1e6   :  { %161 = vsyncpa [#allocation4], 1 }

</bundles_post_ra>
